<compile_context>
chip_gen: v7x
topology: tpu7x:2x2x1
jax: 0.10.0
libtpu: 0.0.40
codegen_flags: <defaults>
</compile_context>

<pallas_src>
from functools import partial

import jax
import jax.numpy as jnp
from jax.experimental import pallas as pl
from jax.experimental.pallas import tpu as pltpu


def _round_up(x, m):
    return ((x + m - 1) // m) * m


def se3_go_head_kernel(feats_ref, poolw_ref, w_ref, b_ref, out_ref, acc_ref,
                       *, n_total, mask_tail):
    """Masked-mean pooling accumulated over node tiles (MXU contraction),
    then the linear head on the last node tile."""
    k = pl.program_id(1)
    bt, nt, d = feats_ref.shape

    @pl.when(k == 0)
    def _init():
        acc_ref[...] = jnp.zeros_like(acc_ref)

    # Cast in-kernel: feats streams in its producer dtype (bf16-safe); the
    # accumulator and contraction stay f32.
    f = feats_ref[...].astype(jnp.float32)          # (bt, nt, D)
    pw = poolw_ref[...]                              # (bt, nt) lane-dense f32

    if mask_tail:
        # Last node tile overhangs N: the clipped DMA leaves stale data in the
        # tail, and stale NaN * 0 == NaN, so zero BOTH operands explicitly.
        node_ok2 = (jax.lax.broadcasted_iota(jnp.int32, (bt, nt), 1)
                    + k * nt) < n_total
        node_ok3 = (jax.lax.broadcasted_iota(jnp.int32, (bt, nt, d), 1)
                    + k * nt) < n_total
        pw = jnp.where(node_ok2, pw, 0.0)
        f = jnp.where(node_ok3, f, 0.0)

    # Node contraction on the MXU as a batched matvec (flash-attn pattern):
    # (bt, 1, nt) @ (bt, nt, D) -> (bt, 1, D).  pw already carries the
    # 1/num_valid_nodes factor, so there is no in-kernel reduce or divide on
    # the mask.  Batch-overhang rows (B % bt != 0) only pollute output rows
    # that are clipped on store, so no batch masking is needed.
    part = jnp.einsum("bmn,bnd->bmd", pw[:, None, :], f,
                      preferred_element_type=jnp.float32)
    acc_ref[...] += part[:, 0, :]                    # (bt, D)

    @pl.when(k == pl.num_programs(1) - 1)
    def _finalize():
        logits = jnp.dot(acc_ref[...], w_ref[...],
                         preferred_element_type=jnp.float32)
        out_ref[...] = logits + b_ref[...]           # (bt, OUT_pad), lane-dense


@partial(jax.jit, static_argnames=("b_tile", "n_tile"))
def se3_go_forward(feats, coors, mask, adj_mat, weight, bias,
                   *, b_tile=128, n_tile=1024):
    """Se3GOModel.forward with the external se3 sub-model's '0' output taken
    as `feats`.  coors / adj_mat are accepted for signature fidelity but are
    only consumed by the (external) se3 submodule."""
    del coors, adj_mat
    B, N, D = feats.shape
    OUT = weight.shape[1]

    # ---- wrapper-side prep (tiny, fused under jit) --------------------------
    OUT_pad = _round_up(OUT, 128)                    # lane-dense output store
    w_pad = jnp.pad(weight.astype(jnp.float32), ((0, 0), (0, OUT_pad - OUT)))
    b_pad = jnp.pad(bias.astype(jnp.float32),
                    (0, OUT_pad - OUT)).reshape(1, OUT_pad)

    # Fold the mean-pool divide into per-node pooling weights (lane-dense 2-D):
    #   pool_w[b, n] = mask[b, n] / max(sum_n mask[b, n], 1)
    mask_f = mask.astype(jnp.float32)
    denom = jnp.maximum(jnp.sum(mask_f, axis=1, keepdims=True), 1.0)  # (B, 1)
    pool_w = mask_f / denom                                            # (B, N)

    # ---- tiling (no padding / copying of feats in HBM) ----------------------
    if B <= 8:
        bt = B                                       # single small batch block
    else:
        # >= 2 batch blocks (v7x megacore), sublane-aligned, grown toward
        # b_tile so the finalize matmul fills the MXU M dimension.
        bt = max(8, min(b_tile, _round_up(-(-B // 2), 8)))
    nt = N if N <= n_tile else n_tile
    grid = (pl.cdiv(B, bt), pl.cdiv(N, nt))          # (parallel batch, node red.)
    mask_tail = (N % nt) != 0                        # ragged last node tile?

    # Explicit VMEM budget: double-buffered inputs/outputs + f32 accumulator.
    f_item = jnp.dtype(feats.dtype).itemsize
    tile_bytes = (2 * bt * nt * D * f_item           # feats stream (producer dtype)
                  + 2 * _round_up(bt, 8) * nt * 4    # pool weights (lane-dense)
                  + 2 * D * OUT_pad * 4              # linear weight (constant)
                  + 2 * 8 * OUT_pad * 4              # bias (sublane-padded row)
                  + 2 * bt * OUT_pad * 4             # output tile
                  + bt * D * 4)                      # accumulator scratch
    vmem_limit = int(min(max(2 * tile_bytes, 4 << 20), 32 << 20))

    kernel = partial(se3_go_head_kernel, n_total=N, mask_tail=mask_tail)

    out_padded = pl.pallas_call(
        kernel,
        out_shape=jax.ShapeDtypeStruct((B, OUT_pad), jnp.float32),
        grid=grid,
        in_specs=[
            pl.BlockSpec((bt, nt, D), lambda b, k: (b, k, 0)),    # feats tile
            pl.BlockSpec((bt, nt), lambda b, k: (b, k)),          # pool weights
            pl.BlockSpec((D, OUT_pad), lambda b, k: (0, 0)),      # linear weight
            pl.BlockSpec((1, OUT_pad), lambda b, k: (0, 0)),      # bias
        ],
        out_specs=pl.BlockSpec((bt, OUT_pad), lambda b, k: (b, 0)),  # resident over k
        scratch_shapes=[pltpu.VMEM((bt, D), jnp.float32)],
        compiler_params=pltpu.CompilerParams(
            dimension_semantics=("parallel", "arbitrary"),
            vmem_limit_bytes=vmem_limit),
    )(feats, pool_w, w_pad, b_pad)

    return out_padded[:, :OUT]


def reference_forward(feats, mask, weight, bias):
    """Pure-JAX reference of masked_mean_pooling + linear."""
    m = mask.astype(jnp.float32)
    summed = jnp.sum(feats.astype(jnp.float32) * m[:, :, None], axis=1)
    denom = jnp.maximum(jnp.sum(m, axis=1, keepdims=True), 1.0)
    pooled = summed / denom
    return pooled @ weight + bias


if __name__ == "__main__":
    # Small shapes consistent with the module:
    #   batch B=2, nodes N=8, feature dim D=32,
    #   go_term='cellular_component' -> out_dim=320
    B, N, D = 2, 8, 32
    OUT = 320  # cellular_component

    key = jax.random.PRNGKey(0)
    k_feats, k_coors, k_mask, k_w, k_b = jax.random.split(key, 5)

    # feats here stand in for the se3_model(...)['0'] degree-0 output.
    feats = jax.random.normal(k_feats, (B, N, D), dtype=jnp.float32)
    coors = jax.random.normal(k_coors, (B, N, 3), dtype=jnp.float32)
    # boolean node mask with a couple of padded positions
    mask = jnp.array(
        jax.random.uniform(k_mask, (B, N)) > 0.2, dtype=jnp.bool_
    ).at[:, 0].set(True)  # ensure at least one valid node per batch
    adj_mat = jnp.zeros((B, N, N), dtype=jnp.bool_)

    # Deterministic nn.Linear(D, OUT) parameters (uniform +-1/sqrt(D), like torch).
    bound = 1.0 / jnp.sqrt(jnp.float32(D))
    weight = jax.random.uniform(k_w, (D, OUT), jnp.float32, -bound, bound)
    bias = jax.random.uniform(k_b, (OUT,), jnp.float32, -bound, bound)

    logits = se3_go_forward(feats, coors, mask, adj_mat, weight, bias)
    logits = jax.block_until_ready(logits)

    ref = reference_forward(feats, mask, weight, bias)
    assert logits.shape == (B, OUT), logits.shape
    # Tolerance allows for the MXU multi-pass f32 contraction vs the XLA
    # reference; a real pooling/linear bug would be off by O(0.1+).
    assert jnp.allclose(logits, ref, atol=5e-4, rtol=5e-4), "mismatch vs reference"

    print("KERNEL_OK")
</pallas_src>

<mosaic_0001>
module attributes {stable_mosaic.version = 11 : i64} {
  func.func @se3_go_head_kernel(%arg0: i32, %arg1: i32, %arg2: memref<2x8x32xf32, #tpu.memory_space<vmem>>, %arg3: memref<2x8xf32, #tpu.memory_space<vmem>>, %arg4: memref<32x384xf32, #tpu.memory_space<vmem>>, %arg5: memref<1x384xf32, #tpu.memory_space<vmem>>, %arg6: memref<2x384xf32, #tpu.memory_space<vmem>>, %arg7: memref<2x32xf32, #tpu.memory_space<vmem>>) attributes {dimension_semantics = [#tpu.dimension_semantics<parallel>, #tpu.dimension_semantics<arbitrary>], iteration_bounds = array<i64: 1, 1>, scalar_prefetch = 0 : i64, scratch_operands = 1 : i64, tpu.core_type = #tpu.core_type<tc>, window_params = [{transform_indices = @transform_0, window_bounds = array<i64: 2, 8, 32>}, {transform_indices = @transform_1, window_bounds = array<i64: 2, 8>}, {pipeline_mode = #tpu.pipeline_mode<synchronous>, transform_indices = @transform_2, window_bounds = array<i64: 32, 384>}, {pipeline_mode = #tpu.pipeline_mode<synchronous>, transform_indices = @transform_3, window_bounds = array<i64: 1, 384>}, {transform_indices = @transform_4, window_bounds = array<i64: 2, 384>}]} {
    %c0_i32 = arith.constant 0 : i32
    %0 = arith.cmpi eq, %arg1, %c0_i32 : i32
    %1 = arith.extui %0 : i1 to i32
    %c0_i32_0 = arith.constant 0 : i32
    %2 = arith.cmpi ne, %1, %c0_i32_0 : i32
    scf.if %2 {
      %cst_11 = arith.constant 0.000000e+00 : f32
      %14 = vector.broadcast %cst_11 : f32 to vector<2x32xf32>
      %c0_12 = arith.constant 0 : index
      %c0_13 = arith.constant 0 : index
      %15 = vector.load %arg7[%c0_12, %c0_13] : memref<2x32xf32, #tpu.memory_space<vmem>>, vector<2x32xf32>
      tpu.vector_store %arg7[%c0_12, %c0_13], %14 {strides = array<i32>} : memref<2x32xf32, #tpu.memory_space<vmem>>, vector<2x32xf32>,
    } else {
    }
    %c0 = arith.constant 0 : index
    %c0_1 = arith.constant 0 : index
    %c0_2 = arith.constant 0 : index
    %3 = vector.load %arg2[%c0, %c0_1, %c0_2] : memref<2x8x32xf32, #tpu.memory_space<vmem>>, vector<2x8x32xf32>
    %c0_3 = arith.constant 0 : index
    %c0_4 = arith.constant 0 : index
    %4 = vector.load %arg3[%c0_3, %c0_4] : memref<2x8xf32, #tpu.memory_space<vmem>>, vector<2x8xf32>
    %5 = vector.shape_cast %4 : vector<2x8xf32> to vector<2x1x8xf32>
    "tpu.trace_start"() <{level = 10 : i32, message = "bmn,bnd->bmd"}> : () -> ()
    %cst = arith.constant dense<0.000000e+00> : vector<2x1x32xf32>
    %6 = tpu.matmul %5, %3, %cst {dimension_numbers = #tpu.dot_dimension_numbers<[2], [1], [1], [2], [0, 0, 0, 1, 1, 2], [0], [0]>} : vector<2x1x8xf32>, vector<2x8x32xf32>, vector<2x1x32xf32> -> vector<2x1x32xf32>
    "tpu.trace_stop"() : () -> ()
    %c0_5 = arith.constant 0 : index
    %c0_6 = arith.constant 0 : index
    %7 = vector.load %arg7[%c0_5, %c0_6] : memref<2x32xf32, #tpu.memory_space<vmem>>, vector<2x32xf32>
    %8 = vector.shape_cast %6 : vector<2x1x32xf32> to vector<2x32xf32>
    %9 = arith.addf %7, %8 : vector<2x32xf32>
    %c0_7 = arith.constant 0 : index
    %c0_8 = arith.constant 0 : index
    %10 = vector.load %arg7[%c0_7, %c0_8] : memref<2x32xf32, #tpu.memory_space<vmem>>, vector<2x32xf32>
    tpu.vector_store %arg7[%c0_7, %c0_8], %9 {strides = array<i32>} : memref<2x32xf32, #tpu.memory_space<vmem>>, vector<2x32xf32>,
    %c0_i32_9 = arith.constant 0 : i32
    %11 = arith.cmpi eq, %arg1, %c0_i32_9 : i32
    %12 = arith.extui %11 : i1 to i32
    %c0_i32_10 = arith.constant 0 : i32
    %13 = arith.cmpi ne, %12, %c0_i32_10 : i32
    scf.if %13 {
      %c0_11 = arith.constant 0 : index
      %c0_12 = arith.constant 0 : index
      %14 = vector.load %arg7[%c0_11, %c0_12] : memref<2x32xf32, #tpu.memory_space<vmem>>, vector<2x32xf32>
      %c0_13 = arith.constant 0 : index
      %c0_14 = arith.constant 0 : index
      %15 = vector.load %arg4[%c0_13, %c0_14] : memref<32x384xf32, #tpu.memory_space<vmem>>, vector<32x384xf32>
      %cst_15 = arith.constant dense<0.000000e+00> : vector<2x384xf32>
      %16 = tpu.matmul %14, %15, %cst_15 {dimension_numbers = #tpu.dot_dimension_numbers<[1], [0], [0], [1], [0, 0, 1, 1], [], []>} : vector<2x32xf32>, vector<32x384xf32>, vector<2x384xf32> -> vector<2x384xf32>
      %c0_16 = arith.constant 0 : index
      %c0_17 = arith.constant 0 : index
      %17 = vector.load %arg5[%c0_16, %c0_17] : memref<1x384xf32, #tpu.memory_space<vmem>>, vector<1x384xf32>
      %18 = vector.broadcast %17 : vector<1x384xf32> to vector<2x384xf32>
      %19 = arith.addf %16, %18 : vector<2x384xf32>
      %c0_18 = arith.constant 0 : index
      %c0_19 = arith.constant 0 : index
      %20 = vector.load %arg6[%c0_18, %c0_19] : memref<2x384xf32, #tpu.memory_space<vmem>>, vector<2x384xf32>
      tpu.vector_store %arg6[%c0_18, %c0_19], %19 {strides = array<i32>} : memref<2x384xf32, #tpu.memory_space<vmem>>, vector<2x384xf32>,
    } else {
    }
    return
  }
  func.func @transform_0(%arg0: i32, %arg1: i32) -> (i32, i32, i32) {
    %c0_i32 = arith.constant 0 : i32
    %c0_i32_0 = arith.constant 0 : i32
    return %arg0, %arg1, %c0_i32 : i32, i32, i32
  }
  func.func @transform_1(%arg0: i32, %arg1: i32) -> (i32, i32) {
    %c0_i32 = arith.constant 0 : i32
    return %arg0, %arg1 : i32, i32
  }
  func.func @transform_2(%arg0: i32, %arg1: i32) -> (i32, i32) {
    %c0_i32 = arith.constant 0 : i32
    %c0_i32_0 = arith.constant 0 : i32
    %c0_i32_1 = arith.constant 0 : i32
    return %c0_i32, %c0_i32_0 : i32, i32
  }
  func.func @transform_3(%arg0: i32, %arg1: i32) -> (i32, i32) {
    %c0_i32 = arith.constant 0 : i32
    %c0_i32_0 = arith.constant 0 : i32
    %c0_i32_1 = arith.constant 0 : i32
    return %c0_i32, %c0_i32_0 : i32, i32
  }
  func.func @transform_4(%arg0: i32, %arg1: i32) -> (i32, i32) {
    %c0_i32 = arith.constant 0 : i32
    %c0_i32_0 = arith.constant 0 : i32
    return %arg0, %c0_i32 : i32, i32
  }
}

</mosaic_0001>

<bundles_post_ra>
// kernel: se3_go_forward.1
= control target key start
LH: loop header
LB: loop body
LE: loop exit
PB: predicated region body
PF: predicated region fallthrough
CT: control target
= control target key end

     0   :  { %v39_v2 = vlaneseq  ;;  %v497_v3 = vmov 0.0   ;;  %v498_v5 = vmov 1966171168   ;;  %vm499_vm0 = vmmov 0   ;;  %s597_s0 = inlined_call_operand.vmem [shape: f32[2,8,32], index: 0, kind: input, shape index: {}]   ;;  %s598_s1 = inlined_call_operand.vmem [shape: f32[2,8], index: 1, kind: input, shape index: {}]   ;;  %s599_s2 = inlined_call_operand.vmem [shape: f32[32,384], index: 2, kind: input, shape index: {}]   ;;  %s600_s3 = inlined_call_operand.vmem [shape: f32[1,384], index: 3, kind: input, shape index: {}]   ;;  %s601_s4 = inlined_call_operand.hbm [shape: f32[2,384], index: 4, kind: output, shape index: {}]  }
   0x1   :  { %v25_v0 = vld [vmem:[%s597_s0 + $0x8] sm:$0xff]  ;;  %v24_v1 = vld [vmem:[%s597_s0] sm:$0xff]  ;;  %437 = vmatprep.subr.mxu1 %v497_v3  ;;  %432 = vmatprep.subr.mxu0 %v497_v3  ;;  %v37_v6 = vunpack.c.l.s4 %v498_v5 }
   0x2   :  { %v418_v4 = vld.sshfl [vmem:[%s598_s1] sm:$0x11 pattern:$0x75316420]  ;;  %438 = vmatpush3.msra.mxu1 %v25_v0  ;;  %439 = vmatprep.mubr.msk.f32.mxu1 %vm499_vm0, %v497_v3  ;;  %v537_v7 = vshrl.u32 %v39_v2, 7 }
   0x3   :  { %9 = vsyncpa [#allocation4], 0  ;;  %433 = vmatpush3.msra.mxu0 %v24_v1  ;;  %434 = vmatprep.mubr.msk.f32.mxu0 %vm499_vm0, %v497_v3  ;;  %v35_v8 = vcombine.high %v418_v4, %v418_v4  ;;  %v38_v9 = vunpack.c.0.s8 %v37_v6  ;;  %vm50_vm1 = vcmask 64512   ;;  %vm22_vm2 = vcmask 254976   ;;  %v210_v13 = vld [vmem:[%s599_s2 + $0x8] sm:$0xff]  ;;  %v213_v14 = vld [vmem:[%s599_s2 + $0x20] sm:$0xff] }
   0x4   :  { %23 = vst.msk [vmem:[#allocation2] sm:$0x3] %vm22_vm2, %v497_v3  ;;  %v453_v15 = vpack.c.bf16 %v213_v14, %v210_v13  ;;  %v209_v16 = vld [vmem:[%s599_s2] sm:$0xff]  ;;  %v212_v17 = vld [vmem:[%s599_s2 + $0x18] sm:$0xff]  ;;  %v211_v18 = vld [vmem:[%s599_s2 + $0x10] sm:$0xff]  ;;  %v500_v21 = vmov 0.0|0.0  }
   0x5   :  { %v41_v10 = vsub.s32 %v38_v9, %v537_v7  ;;  %v455_v19 = vpack.c.bf16 %v212_v17, %v209_v16  ;;  %v214_v20 = vld [vmem:[%s599_s2 + $0x28] sm:$0xff]  ;;  %461 = vmatprep.subr.bf16.mxu1 %v500_v21  ;;  %v216_v23 = vld [vmem:[%s599_s2 + $0x38] sm:$0xff]  ;;  %v219_v24 = vld [vmem:[%s599_s2 + $0x50] sm:$0xff]  ;;  %vm199_vm3 = vcmask 1041409   ;;  %vm238_vm4 = vcmask 261120  }
   0x6   :  { %454 = vmatprep.subr.bf16.mxu0 %v453_v15  ;;  %v462_v22 = vpack.c.bf16 %v214_v20, %v211_v18  ;;  %v215_v25 = vld [vmem:[%s599_s2 + $0x30] sm:$0xff]  ;;  %v457_v26 = vpack.c.bf16 %v219_v24, %v216_v23  ;;  %v218_v27 = vld [vmem:[%s599_s2 + $0x48] sm:$0xff]  ;;  %v217_v28 = vld [vmem:[%s599_s2 + $0x40] sm:$0xff]  ;;  %v225_v41 = vsub.s32 0, %v537_v7  ;;  %v233_v43 = vsub.s32 2, %v537_v7 }
   0x7   :  { %v49_v11 = vrot.slane %v35_v8, %v41_v10  ;;  %v42_v12 = vrot.slane %v418_v4, %v41_v10  ;;  %v220_v29 = vld [vmem:[%s599_s2 + $0x58] sm:$0xff]  ;;  %v459_v30 = vpack.c.bf16 %v218_v27, %v215_v25  ;;  %v221_v42 = vld [vmem:[%s600_s3] sm:$0x7]  ;;  %v501_v44 = vmov 1983009808   ;;  %s502_s3 = smov [#allocation3]  }
   0x8   :  { %v465_v31 = vpack.c.bf16 %v220_v29, %v217_v28  ;;  %v388_v45 = vunpack.c.l.s4 %v501_v44  ;;  %v229_v46 = vsub.s32 1, %v537_v7  ;;  %v226_v47 = vrot.slane %v221_v42, %v225_v41  ;;  %s410_s18 = sshll.u32 %s502_s3, 4  ;;  %s411_s18 = int_to_ptr.vmem [resolvable:$true] %s410_s18 }
   0x9   :  { %440 = vmatmul.mubr.msk.f32.vlgmr.msra.gmra.mrb[0].mxu1 %vm50_vm1, %v49_v11  ;;  %435 = vmatmul.mubr.msk.f32.vlgmr.msra.gmra.mrb[0].mxu0 %vm50_vm1, %v42_v12  ;;  %v234_v48 = vrot.slane %v221_v42, %v233_v43  ;;  %s473_s19 = scalar_lea.vmem %s411_s18, 96  ;;  %p478_p1 = scmp.lt.s32.totalorder %s411_s18, %s411_s18 }
   0xa   :  { %306 = vmatprep.mubr.f32.mxu0 %v497_v3  ;;  %450 = vmatprep.mubr.msk.f32.mxu1 %vm499_vm0, %v497_v3  ;;  %v389_v49 = vunpack.c.0.s8 %v388_v45  ;;  %v230_v50 = vrot.slane %v221_v42, %v229_v46  ;;  %p474_p0 = scmp.ne.s32.totalorder %s411_s18, %s473_s19  ;;  %p479_p2 = scmp.lt.s32.totalorder %s473_s19, %s473_s19 }
   0xb   :  { %456 = vmatpush1.bf16.msra.mxu0 %v455_v19  ;;  %463 = vmatpush3.bf16.msra.mxu1 %v462_v22  ;;  %v195_v35 = vld [vmem:[#allocation2] sm:$0x3] }
   0xc   :  { %458 = vmatprep.subr.bf16.mxu0 %v457_v26  ;;  %464 = vmatprep.subr.bf16.mxu1 %v500_v21  ;;  %v392_v57 = vsub.s32 %v389_v49, %v537_v7  ;;  %p480_p3 = por %p479_p2, %p478_p1 }
   0xe   :  { %p481_p4 = pnand %p480_p3, %p474_p0 }
   0xf   :  { %460 = vmatpush1.bf16.msra.mxu0 %v459_v30  ;;  %466 = vmatpush3.bf16.msra.mxu1 %v465_v31 }
  0xdc   :  { %v191_v32 = vpop.f32.mrb[0].mxu1  ;;  %v119_v33 = vpop.f32.mrb[0].mxu0 }
  0xdd   :  { %v198_v34 = vrot.slane %v191_v32, 7  ;;  %v441_v36 = vpop.f32.mrb[1].mxu1  ;;  %v436_v37 = vpop.f32.mrb[1].mxu0 }
  0xdf   :  { %v200_v38 = vsel %vm199_vm3, %v198_v34, %v119_v33 }
  0xe0   :  { %v202_v39 = vadd.f32 %v200_v38, %v195_v35 }
  0xe2   :  { %204 = vst.msk [vmem:[#allocation2] sm:$0x3] %vm22_vm2, %v202_v39 }
  0xe9   :  { %v208_v40 = vld [vmem:[#allocation2] sm:$0x3] }
  0xea   :  { %421 = vmatmul.mubr.msk.f32.vlgmr.msra.gmra.mrb[2].mxu0 %vm238_vm4, %v208_v40  ;;  %451 = vmatmul.mubr.msk.f32.vlgmr.msra.gmra.mrb[2].mxu1 %vm238_vm4, %v208_v40 }
 0x1bd   :  { %v308_v51 = vpop.f32.mrb[2].mxu0  ;;  %v379_v52 = vpop.f32.mrb[2].mxu1 }
 0x1be   :  { %v309_v53 = vadd.f32 %v308_v51, %v226_v47  ;;  %v310_v54 = vpop.f32.mrb[3].mxu0  ;;  %v452_v55 = vpop.f32.mrb[3].mxu1  ;;  %v380_v56 = vadd.f32 %v379_v52, %v234_v48 }
 0x1bf   :  { %v311_v58 = vadd.f32 %v310_v54, %v230_v50 }
 0x1c0   :  { %v400_v60 = vrot.slane %v380_v56, %v392_v57 }
 0x1c1   :  { %v386_v59 = vcombine.low %v309_v53, %v311_v58 }
 0x1c3   :  { %v393_v61 = vrot.slane %v386_v59, %v392_v57 }
 0x1c5   :  { %v401_v62 = vcombine.low %v393_v61, %v400_v60 }
 0x1c7   :  { %403 = vst [vmem:[#allocation3] sm:$0x3f] %v401_v62 }
 0x1c8   :  { %484 = shalt.err (!%p481_p4)
}
 0x1c9   :  { %s485_s1 = scalar_lea.hbm %s601_s4, 96 }
 0x1ca   :  { %p486_p5 = scmp.ne.s32.totalorder %s601_s4, %s485_s1  ;;  %p489_p6 = scmp.lt.u32.totalorder %s485_s1, %s601_s4 }
 0x1cc   :  { %p491_p7 = pnand %p489_p6, %p486_p5 }
 0x1ce   :  { %494 = shalt.err (!%p491_p7)
}
 0x1cf   :  { %413 = dma.vmem_to_hbm [thread:$0]  %s411_s18, 96, %s601_s4, [#allocation4]  }
 0x1d0   :  { %495 = dma.done.wait [#allocation4], 96  }
 0x1d1   :  { %496 = vsyncadd [#allocation4], 4294967200 }
 0x1d2   :  { %417 = vsyncpa [#allocation4], 1 }

</bundles_post_ra>
